<compile_context>
chip_gen: v6e
topology: v6e:2x2x1
jax: 0.10.0
libtpu: 0.0.40
codegen_flags: <defaults>
</compile_context>

<pallas_src>
import functools
import math

import jax
import jax.numpy as jnp
import numpy as np
from jax.experimental import pallas as pl
from jax.experimental.pallas import tpu as pltpu


def _cnn_branch_kernel(xt_ref, wt_ref, b_ref, o_ref, *, m_chunk):
    """Fused conv (single matmul) + bias + ReLU + 2x2/2 max-pool.

    xt_ref: (Kc, 4*m_chunk) bf16  im2col^T; lane-chunk p holds the conv rows
                                  whose output pixel is the p-th element of
                                  each 2x2 pooling window (batch folded in).
    wt_ref: (C_out, Kc)      bf16 packed weights (W^T @ X^T orientation).
    b_ref : (C_out, 1)       f32  bias.
    o_ref : (C_out, m_chunk) f32  pooled output (lanes >= N*Hp*Wp are junk).
    """
    # One MXU matmul over the full K*K*C_in contraction, f32 accumulation.
    acc = jnp.dot(wt_ref[...], xt_ref[...], preferred_element_type=jnp.float32)
    y = jnp.maximum(acc + b_ref[...], 0.0)                       # bias + ReLU
    # MaxPool(2,2): the four window positions live in 128-aligned lane chunks,
    # so pooling is three vreg-aligned maxima -- no scratch, no strided reads.
    m01 = jnp.maximum(y[:, 0 * m_chunk:1 * m_chunk], y[:, 1 * m_chunk:2 * m_chunk])
    m23 = jnp.maximum(y[:, 2 * m_chunk:3 * m_chunk], y[:, 3 * m_chunk:4 * m_chunk])
    o_ref[...] = jnp.maximum(m01, m23)


def cnn_branch(x, weight, bias):
    """x: (N, C_in, H, W) f32, weight: (C_out, C_in, K, K), bias: (C_out,).
    Returns (N, C_out, (H-K+1)//2, (W-K+1)//2), matching the PyTorch module."""
    N, C_in, H, W = x.shape
    C_out, C_in_w, K, K2 = weight.shape
    assert C_in_w == C_in and K == K2
    Ho, Wo = H - K + 1, W - K + 1
    Hp, Wp = Ho // 2, Wo // 2
    assert Hp >= 1 and Wp >= 1

    KKC = K * K * C_in
    Kc = -(-KKC // 16) * 16                 # pad contraction to bf16 sublane tile
    NHW = N * Hp * Wp
    m_chunk = -(-NHW // 128) * 128          # lane-dense output chunk (mult. of 128)

    # --- im2col outside the kernel (tiny at these shapes), bf16 cast once ----
    # patches[n, i, j, (kh*K + kw)*C_in + c] = x[n, c, i+kh, j+kw]
    cols = jnp.stack(
        [x[:, :, kh:kh + Ho, kw:kw + Wo] for kh in range(K) for kw in range(K)],
        axis=-1)                                          # (N, C_in, Ho, Wo, K*K)
    patches = jnp.transpose(cols, (0, 2, 3, 4, 1)).reshape(N, Ho, Wo, KKC)

    # Group conv rows by 2x2-pool window position p = 2*dp + dq; each group is
    # zero-padded to a multiple of 128 lanes so the kernel's pooling maxima are
    # vreg-aligned and its stores unmasked.
    chunks = []
    for dp in range(2):
        for dq in range(2):
            sub = patches[:, dp:2 * Hp:2, dq:2 * Wp:2, :].reshape(NHW, KKC)
            chunks.append(jnp.pad(sub, ((0, m_chunk - NHW), (0, Kc - KKC))))
    xt = jnp.concatenate(chunks, axis=0).T.astype(jnp.bfloat16)   # (Kc, 4*m_chunk)

    # Packed weights: wt[o, (kh*K + kw)*C_in + c] = weight[o, c, kh, kw].
    wt = jnp.transpose(weight, (0, 2, 3, 1)).reshape(C_out, KKC)
    wt = jnp.pad(wt, ((0, 0), (0, Kc - KKC))).astype(jnp.bfloat16)
    b2 = bias.reshape(C_out, 1).astype(jnp.float32)

    kernel = functools.partial(_cnn_branch_kernel, m_chunk=m_chunk)
    out = pl.pallas_call(
        kernel,
        out_shape=jax.ShapeDtypeStruct((C_out, m_chunk), jnp.float32),
        in_specs=[
            pl.BlockSpec(memory_space=pltpu.MemorySpace.VMEM),   # xt (im2col^T)
            pl.BlockSpec(memory_space=pltpu.MemorySpace.VMEM),   # wt (packed)
            pl.BlockSpec(memory_space=pltpu.MemorySpace.VMEM),   # bias
        ],
        out_specs=pl.BlockSpec(memory_space=pltpu.MemorySpace.VMEM),
    )(xt, wt, b2)

    # Drop padded lanes, back to NCHW.
    out = out[:, :NHW].reshape(C_out, N, Hp, Wp)
    return jnp.transpose(out, (1, 0, 2, 3))


def _reference(x, weight, bias):
    """Pure-JAX/XLA reference: relu(conv2d(x)) -> maxpool2d(2,2)."""
    y = jax.lax.conv_general_dilated(
        x, weight, window_strides=(1, 1), padding="VALID",
        dimension_numbers=("NCHW", "OIHW", "NCHW"))
    y = jnp.maximum(y + bias[None, :, None, None], 0.0)
    return jax.lax.reduce_window(
        y, -jnp.inf, jax.lax.max,
        window_dimensions=(1, 1, 2, 2), window_strides=(1, 1, 2, 2),
        padding="VALID")


if __name__ == "__main__":
    # Small shapes consistent with the module: batch=2, channels=4, spatial=16,
    # output_channels=8, patch_size=3.
    N, C_in, H, W = 2, 4, 16, 16
    C_out, patch = 8, 3

    key = jax.random.PRNGKey(0)
    kx, kw, kb = jax.random.split(key, 3)
    x = jax.random.normal(kx, (N, C_in, H, W), jnp.float32)
    bound = 1.0 / math.sqrt(C_in * patch * patch)          # PyTorch-style init scale
    weight = jax.random.uniform(kw, (C_out, C_in, patch, patch), jnp.float32,
                                -bound, bound)
    bias = jax.random.uniform(kb, (C_out,), jnp.float32, -bound, bound)

    out = jax.block_until_ready(cnn_branch(x, weight, bias))
    ref = jax.block_until_ready(_reference(x, weight, bias))

    assert out.shape == (N, C_out, (H - patch + 1) // 2, (W - patch + 1) // 2)
    np.testing.assert_allclose(np.asarray(out), np.asarray(ref),
                               rtol=2e-2, atol=2e-2)
    print("KERNEL_OK")
</pallas_src>

<mosaic_0001>
module attributes {stable_mosaic.version = 11 : i64} {
  func.func @_cnn_branch_kernel(%arg0: memref<48x512xbf16, #tpu.memory_space<vmem>>, %arg1: memref<8x48xbf16, #tpu.memory_space<vmem>>, %arg2: memref<8x1xf32, #tpu.memory_space<vmem>>, %arg3: memref<8x128xf32, #tpu.memory_space<vmem>>) attributes {dimension_semantics = [], scalar_prefetch = 0 : i64, scratch_operands = 0 : i64, tpu.core_type = #tpu.core_type<tc>} {
    %c0 = arith.constant 0 : index
    %c0_0 = arith.constant 0 : index
    %0 = vector.load %arg1[%c0, %c0_0] : memref<8x48xbf16, #tpu.memory_space<vmem>>, vector<8x48xbf16>
    %c0_1 = arith.constant 0 : index
    %c0_2 = arith.constant 0 : index
    %1 = vector.load %arg0[%c0_1, %c0_2] : memref<48x512xbf16, #tpu.memory_space<vmem>>, vector<48x512xbf16>
    %cst = arith.constant dense<0.000000e+00> : vector<8x512xf32>
    %2 = tpu.matmul %0, %1, %cst {dimension_numbers = #tpu.dot_dimension_numbers<[1], [0], [0], [1], [0, 0, 1, 1], [], []>} : vector<8x48xbf16>, vector<48x512xbf16>, vector<8x512xf32> -> vector<8x512xf32>
    %c0_3 = arith.constant 0 : index
    %c0_4 = arith.constant 0 : index
    %3 = vector.load %arg2[%c0_3, %c0_4] : memref<8x1xf32, #tpu.memory_space<vmem>>, vector<8x1xf32>
    %4 = vector.broadcast %3 : vector<8x1xf32> to vector<8x512xf32>
    %5 = arith.addf %2, %4 : vector<8x512xf32>
    %cst_5 = arith.constant 0.000000e+00 : f32
    %6 = vector.broadcast %cst_5 : f32 to vector<8x512xf32>
    %7 = arith.maximumf %5, %6 : vector<8x512xf32>
    %8 = vector.extract_strided_slice %7 {offsets = [0, 0], sizes = [8, 128], strides = [1, 1]} : vector<8x512xf32> to vector<8x128xf32>
    %9 = vector.extract_strided_slice %7 {offsets = [0, 128], sizes = [8, 128], strides = [1, 1]} : vector<8x512xf32> to vector<8x128xf32>
    %10 = arith.maximumf %8, %9 : vector<8x128xf32>
    %11 = vector.extract_strided_slice %7 {offsets = [0, 256], sizes = [8, 128], strides = [1, 1]} : vector<8x512xf32> to vector<8x128xf32>
    %12 = vector.extract_strided_slice %7 {offsets = [0, 384], sizes = [8, 128], strides = [1, 1]} : vector<8x512xf32> to vector<8x128xf32>
    %13 = arith.maximumf %11, %12 : vector<8x128xf32>
    %14 = arith.maximumf %10, %13 : vector<8x128xf32>
    %c0_6 = arith.constant 0 : index
    %c0_7 = arith.constant 0 : index
    %15 = vector.load %arg3[%c0_6, %c0_7] : memref<8x128xf32, #tpu.memory_space<vmem>>, vector<8x128xf32>
    tpu.vector_store %arg3[%c0_6, %c0_7], %14 {strides = array<i32>} : memref<8x128xf32, #tpu.memory_space<vmem>>, vector<8x128xf32>,
    return
  }
}

</mosaic_0001>

<bundles_post_ra>
// kernel: tpu_custom_call.1
= control target key start
LH: loop header
LB: loop body
LE: loop exit
PB: predicated region body
PF: predicated region fallthrough
CT: control target
= control target key end

     0   :  { %8 = vsyncpa [#allocation3], 0  ;;  %s337_s0 = inlined_call_operand.hbm [shape: bf16[48,512], index: 0, kind: input, shape index: {}]   ;;  %s338_s1 = inlined_call_operand.vmem [shape: bf16[8,48], index: 1, kind: input, shape index: {}]   ;;  %s339_s2 = inlined_call_operand.vmem [shape: f32[8,1], index: 2, kind: input, shape index: {}]   ;;  %s340_s3 = inlined_call_operand.hbm [shape: f32[8,128], index: 3, kind: output, shape index: {}]  }
   0x1   :  { %9 = vsyncpa [#allocation4], 0  ;;  %s300_s12 = smov [#allocation2]  }
   0x2   :  { %s15_s13 = sshll.u32 %s300_s12, 4  ;;  %s16_s13 = int_to_ptr.vmem [resolvable:$true] %s15_s13 }
   0x3   :  { %s264_s14 = scalar_lea.vmem %s16_s13, 1536  ;;  %p269_p1 = scmp.lt.s32.totalorder %s16_s13, %s16_s13 }
   0x4   :  { %p265_p0 = scmp.ne.s32.totalorder %s16_s13, %s264_s14  ;;  %p270_p2 = scmp.lt.s32.totalorder %s264_s14, %s264_s14 }
   0x6   :  { %p271_p3 = por %p270_p2, %p269_p1 }
   0x8   :  { %p272_p4 = pnand %p271_p3, %p265_p0 }
   0xa   :  { %275 = shalt.err (!%p272_p4)
}
   0xb   :  { %s301_s15 = smov 256   ;;  %s302_s16 = smov 16  }
   0xc   :  { %21 = dma.hbm_to_vmem [thread:$0]  %s337_s0, 1536, %s16_s13, [#allocation3], %s301_s15, %s301_s15, %s302_s16  }
   0xd   :  { %296 = dma.done.wait [#allocation3], 1536  }
   0xe   :  { %297 = vsyncadd [#allocation3], 4294965760  ;;  %v303_v0 = vmov 0   ;;  %v238_v1 = vld [vmem:[#allocation2 + $0x44] ss:$16 sps:$4 sm:$0xff]   ;;  %vm109_vm0 = vcmask 392192  }
   0xf   :  { %145 = vmatprep.mubr.bf16.mxu0 %v303_v0  ;;  %186 = vmatprep.mubr.bf16.mxu1 %v303_v0  ;;  %v240_v2 = vld [vmem:[#allocation2 + $0x4c] ss:$16 sps:$4 sm:$0xff]   ;;  %v242_v3 = vld [vmem:[#allocation2 + $0x40] ss:$16 sps:$4 sm:$0xff]   ;;  %v243_v4 = vld [vmem:[#allocation2 + $0x48] ss:$16 sps:$4 sm:$0xff]  }
  0x10   :  { %237 = vset.pattern.permute.xlu0 %v303_v0  ;;  %123 = vmatprep.subr.bf16.mxu0 %v238_v1  ;;  %v244_v5 = vld [vmem:[#allocation2 + $0x24] ss:$16 sps:$4 sm:$0xff]   ;;  %v246_v6 = vld [vmem:[#allocation2 + $0x2c] ss:$16 sps:$4 sm:$0xff]   ;;  %v248_v7 = vld [vmem:[#allocation2 + $0x20] ss:$16 sps:$4 sm:$0xff]  }
  0x11   :  { %164 = vmatprep.subr.bf16.mxu1 %v240_v2  ;;  %124 = vmatpush1.bf16.msra.mxu0 %v242_v3  ;;  %v249_v8 = vld [vmem:[#allocation2 + $0x28] ss:$16 sps:$4 sm:$0xff]   ;;  %v250_v9 = vld [vmem:[#allocation2 + $0x4] ss:$16 sps:$4 sm:$0xff]   ;;  %v252_v10 = vld [vmem:[#allocation2 + $0xc] ss:$16 sps:$4 sm:$0xff]  }
  0x12   :  { %165 = vmatpush1.bf16.msra.mxu1 %v243_v4  ;;  %125 = vmatprep.subr.bf16.mxu0 %v244_v5  ;;  %v254_v11 = vld [vmem:[#allocation2] ss:$16 sps:$4 sm:$0xff]   ;;  %v255_v12 = vld [vmem:[#allocation2 + $0x8] ss:$16 sps:$4 sm:$0xff]  }
  0x13   :  { %166 = vmatprep.subr.bf16.mxu1 %v246_v6  ;;  %v43_v13 = vld [vmem:[%s339_s2] sm:$0xff] }
  0x14   :  { %46 = vperm.xlu0 %237, %v43_v13   ;;  %v30_v14 = vld [vmem:[%s338_s1] sm:$0xf]  ;;  %s304_s1 = smov [#allocation5]  }
  0x15   :  { %126 = vmatpush1.bf16.msra.mxu0 %v248_v7  ;;  %s209_s2 = sshll.u32 %s304_s1, 4  ;;  %s210_s2 = int_to_ptr.vmem [resolvable:$true] %s209_s2 }
  0x16   :  { %167 = vmatpush1.bf16.msra.mxu1 %v249_v8  ;;  %127 = vmatprep.subr.bf16.mxu0 %v250_v9  ;;  %s276_s22 = scalar_lea.vmem %s210_s2, 128  ;;  %p281_p6 = scmp.lt.s32.totalorder %s210_s2, %s210_s2 }
  0x17   :  { %168 = vmatprep.subr.bf16.mxu1 %v252_v10  ;;  %p277_p5 = scmp.ne.s32.totalorder %s210_s2, %s276_s22  ;;  %p282_p7 = scmp.lt.s32.totalorder %s276_s22, %s276_s22 }
  0x19   :  { %128 = vmatpush1.bf16.msra.mxu0 %v254_v11  ;;  %p283_p8 = por %p282_p7, %p281_p6 }
  0x1a   :  { %169 = vmatpush1.bf16.msra.mxu1 %v255_v12 }
  0x1b   :  { %p284_p9 = pnand %p283_p8, %p277_p5 }
  0x1c   :  { %230 = vmatmul.mubr.msk.bf16.vlgmr.msra.gmra.mxu0 %vm109_vm0, %v30_v14 }
  0x1d   :  { %231 = vmatmul.mubr.msk.bf16.vlgmr.msra.gmra.mxu1 %vm109_vm0, %v30_v14 }
  0x8f   :  { %v47_v15 = vpop.permute.xlu0 %46 }
  0xdc   :  { %v147_v16 = vpop.f32.mrf.mxu0 }
  0xdd   :  { %v188_v17 = vpop.f32.mrf.mxu1  ;;  %v148_v18 = vadd.f32 %v147_v16, %v47_v15 }
  0xde   :  { %v189_v19 = vadd.f32 %v188_v17, %v47_v15  ;;  %v149_v20 = vpop.f32.mrf.mxu0 }
  0xdf   :  { %v190_v21 = vpop.f32.mrf.mxu1  ;;  %v150_v22 = vadd.f32 %v149_v20, %v47_v15  ;;  %v195_v26 = vmax.f32 %v148_v18, 0.0 }
  0xe0   :  { %v191_v23 = vadd.f32 %v190_v21, %v47_v15  ;;  %v151_v24 = vpop.f32.mrf.mxu0  ;;  %v197_v27 = vmax.f32 %v189_v19, 0.0 }
  0xe1   :  { %v192_v25 = vpop.f32.mrf.mxu1  ;;  %v196_v28 = vmax.f32 %v150_v22, 0.0 }
  0xe2   :  { %v198_v29 = vmax.f32 %v191_v23, 0.0  ;;  %v152_v30 = vpop.f32.mrf.mxu0 }
  0xe3   :  { %v193_v31 = vpop.f32.mrf.mxu1  ;;  %v199_v32 = vmax.f32 %v195_v26, %v196_v28 }
  0xe4   :  { %v200_v33 = vmax.f32 %v197_v27, %v198_v29 }
  0xe6   :  { %v201_v34 = vmax.f32 %v199_v32, %v200_v33 }
  0xe8   :  { %202 = vst [vmem:[#allocation5] sm:$0xff] %v201_v34 }
  0xe9   :  { %287 = shalt.err (!%p284_p9)
}
  0xea   :  { %212 = dma.vmem_to_hbm [thread:$0]  %s210_s2, 128, %s340_s3, [#allocation4]  }
  0xeb   :  { %298 = dma.done.wait [#allocation4], 128  }
  0xec   :  { %299 = vsyncadd [#allocation4], 4294967168 }
  0xed   :  { %216 = vsyncpa [#allocation3], 1 }
  0xee   :  { %217 = vsyncpa [#allocation4], 1 }

</bundles_post_ra>
